<compile_context>
chip_gen: v7x
topology: tpu7x:2x2x1
jax: 0.10.0
libtpu: 0.0.40
codegen_flags: <defaults>
</compile_context>

<pallas_src>
import jax
import jax.numpy as jnp
from jax.experimental import pallas as pl
from jax.experimental.pallas import tpu as pltpu


# --------------------------------------------------------------------------
# helpers
# --------------------------------------------------------------------------
def _round_up(x, m):
    return ((x + m - 1) // m) * m


def _pick_tile(total, cap):
    """Largest multiple of 128 that divides `total` and is <= cap (>= 128)."""
    cap = max(128, cap)
    best = 128
    t = 256
    limit = min(cap, total)
    while t <= limit:
        if total % t == 0:
            best = t
        t += 128
    return best


def _vmem_limit_bytes():
    # Generation-aware: ~96 MiB on v5e/v6e (128 MiB physical), ~56 MiB on v7x
    # (64 MiB physical per TensorCore).
    try:
        cap = int(pltpu.get_tpu_info().vmem_capacity_bytes)
    except Exception:
        cap = 64 * 1024 * 1024
    return int(min(96 * 1024 * 1024, cap - 8 * 1024 * 1024))


def _compiler_params():
    return pltpu.CompilerParams(
        dimension_semantics=("parallel", "arbitrary"),
        vmem_limit_bytes=_vmem_limit_bytes(),
    )


# --------------------------------------------------------------------------
# kernels
# --------------------------------------------------------------------------
def _accumulate_hop(adj_ref, x_ref, acc_ref):
    """acc += adj_tile(bf16) @ x_tile(bf16, already pre-scaled by src norm)."""
    @pl.when(pl.program_id(1) == 0)
    def _():
        acc_ref[...] = jnp.zeros_like(acc_ref)

    acc_ref[...] += jnp.dot(adj_ref[...], x_ref[...],
                            preferred_element_type=jnp.float32)


def _propagate_kernel(adj_ref, x_ref, norm2_ref, out_ref, acc_ref):
    """Intermediate hop.

    Emits (norm_dst^2 * (A @ x_prescaled)) in bf16, which is exactly the
    next hop's pre-scaled source feature (hop_output * norm)."""
    _accumulate_hop(adj_ref, x_ref, acc_ref)

    @pl.when(pl.program_id(1) == pl.num_programs(1) - 1)
    def _():
        # TODO(synk): PNY_Norm(prev, agg) definition not provided -> pass-through.
        out_ref[...] = (acc_ref[...] * norm2_ref[...]).astype(out_ref.dtype)


def _propagate_mlp_kernel(adj_ref, x_ref, norm_ref,
                          w1_ref, b1_ref, w2_ref, b2_ref, out_ref, acc_ref):
    """Last hop with the fc1 -> ReLU -> fc2 -> sigmoid epilogue fused."""
    _accumulate_hop(adj_ref, x_ref, acc_ref)

    @pl.when(pl.program_id(1) == pl.num_programs(1) - 1)
    def _():
        # final hop output = norm_dst * acc; cast to bf16 for the MXU.
        feat = (acc_ref[...] * norm_ref[...]).astype(jnp.bfloat16)
        h = jnp.dot(feat, w1_ref[...], preferred_element_type=jnp.float32)
        h = jnp.maximum(h + b1_ref[...].astype(jnp.float32), 0.0)
        y = jnp.dot(h.astype(jnp.bfloat16), w2_ref[...],
                    preferred_element_type=jnp.float32)
        out_ref[...] = jax.nn.sigmoid(y + b2_ref[...].astype(jnp.float32))


# --------------------------------------------------------------------------
# pallas_call wrappers
# --------------------------------------------------------------------------
def _propagate(adj_b, x, norm2, tile_m, tile_k):
    np_, fin_p = x.shape
    grid = (np_ // tile_m, np_ // tile_k)
    return pl.pallas_call(
        _propagate_kernel,
        out_shape=jax.ShapeDtypeStruct((np_, fin_p), jnp.bfloat16),
        grid_spec=pltpu.PrefetchScalarGridSpec(
            num_scalar_prefetch=0,
            grid=grid,
            in_specs=[
                pl.BlockSpec((tile_m, tile_k), lambda i, k: (i, k)),   # adj (bf16)
                pl.BlockSpec((tile_k, fin_p), lambda i, k: (k, 0)),    # x (bf16, pre-scaled)
                pl.BlockSpec((tile_m, 1), lambda i, k: (i, 0)),        # norm^2 (dst)
            ],
            out_specs=pl.BlockSpec((tile_m, fin_p), lambda i, k: (i, 0)),
            scratch_shapes=[pltpu.VMEM((tile_m, fin_p), jnp.float32)],
        ),
        compiler_params=_compiler_params(),
        cost_estimate=pl.CostEstimate(
            flops=2 * np_ * np_ * fin_p,
            transcendentals=0,
            bytes_accessed=np_ * np_ * 2
            + (np_ // tile_m) * np_ * fin_p * 2
            + np_ * fin_p * 2 + np_ * 4),
    )(adj_b, x, norm2)


def _propagate_mlp(adj_b, x, norm, w1p, b1p, w2p, b2p, tile_m, tile_k):
    np_, fin_p = x.shape
    hid_p = w1p.shape[1]
    out_p = w2p.shape[1]
    grid = (np_ // tile_m, np_ // tile_k)
    return pl.pallas_call(
        _propagate_mlp_kernel,
        out_shape=jax.ShapeDtypeStruct((np_, out_p), jnp.float32),
        grid_spec=pltpu.PrefetchScalarGridSpec(
            num_scalar_prefetch=0,
            grid=grid,
            in_specs=[
                pl.BlockSpec((tile_m, tile_k), lambda i, k: (i, k)),    # adj (bf16)
                pl.BlockSpec((tile_k, fin_p), lambda i, k: (k, 0)),     # x (bf16, pre-scaled)
                pl.BlockSpec((tile_m, 1), lambda i, k: (i, 0)),         # norm (dst)
                # Weights: constant block index -> fetched once, resident in VMEM.
                pl.BlockSpec((fin_p, hid_p), lambda i, k: (0, 0)),      # w1 (bf16)
                pl.BlockSpec((1, hid_p), lambda i, k: (0, 0)),          # b1 (bf16)
                pl.BlockSpec((hid_p, out_p), lambda i, k: (0, 0)),      # w2 (bf16)
                pl.BlockSpec((1, out_p), lambda i, k: (0, 0)),          # b2 (bf16)
            ],
            out_specs=pl.BlockSpec((tile_m, out_p), lambda i, k: (i, 0)),
            scratch_shapes=[pltpu.VMEM((tile_m, fin_p), jnp.float32)],
        ),
        compiler_params=_compiler_params(),
        cost_estimate=pl.CostEstimate(
            flops=2 * np_ * np_ * fin_p
            + 2 * np_ * (fin_p * hid_p + hid_p * out_p),
            transcendentals=np_ * out_p,
            bytes_accessed=np_ * np_ * 2
            + (np_ // tile_m) * np_ * fin_p * 2
            + (fin_p * hid_p + hid_p * out_p) * 2
            + np_ * out_p * 4),
    )(adj_b, x, norm, w1p, b1p, w2p, b2p)


# --------------------------------------------------------------------------
# public forward
# --------------------------------------------------------------------------
def sgc2onv_pny_forward(adj, feat, w1, b1, w2, b2, *, k=1,
                        max_tile_m=2048, max_tile_k=512):
    """adj: [N,N] dense adjacency (adj[dst,src]); feat: [N,in_feats];
    w1: [in_feats,hid], b1: [hid], w2: [hid,out], b2: [out]."""
    assert k >= 1
    n, in_f = feat.shape
    hid = w1.shape[1]
    out_f = w2.shape[1]

    # Node dim padded only to the 128 hardware minimum; tiles picked as
    # 128-multiple divisors of the padded size (dst and src tiles decoupled).
    np_ = _round_up(n, 128)
    fin_p = _round_up(in_f, 128)
    hid_p = _round_up(hid, 128)
    out_p = _round_up(out_f, 128)

    tile_k = _pick_tile(np_, max_tile_k)
    # Simple VMEM budget guard for the dst tile:
    # acc(f32) + 2x out(bf16) + 2x adj tile(bf16)  <~ 24 MiB.
    cap_m = max(128, max_tile_m)
    while cap_m > 128 and cap_m * (fin_p * 8 + tile_k * 4) > 24 * 1024 * 1024:
        cap_m //= 2
    tile_m = _pick_tile(np_, cap_m)

    adj_f32 = adj.astype(jnp.float32)

    # Degree / symmetric norm: computed in the same XLA pass that casts and
    # pads the adjacency (no separate Pallas adjacency read).
    degs = jnp.maximum(jnp.sum(adj_f32, axis=1), 1.0)       # clamp(min=1)
    norm = jnp.power(degs, -0.5)[:, None]                   # [n, 1]

    # adj (0/1) streamed as bf16: exact for 0/1 entries, halves HBM bytes of
    # the dominant stream, and hits the bf16 MXU fast path.  Acc stays f32.
    adj_b = jnp.pad(adj_f32.astype(jnp.bfloat16), ((0, np_ - n), (0, np_ - n)))
    norm_p = jnp.pad(norm, ((0, np_ - n), (0, 0)), constant_values=1.0)
    norm2_p = norm_p * norm_p

    # Source features pre-scaled by the src norm and streamed in bf16; padded
    # rows/cols are zero so they never contaminate real outputs.
    x = jnp.pad((feat.astype(jnp.float32) * norm).astype(jnp.bfloat16),
                ((0, np_ - n), (0, fin_p - in_f)))

    # MLP weights resident in VMEM as bf16 (activations are bf16-limited).
    w1p = jnp.pad(w1.astype(jnp.bfloat16), ((0, fin_p - in_f), (0, hid_p - hid)))
    b1p = jnp.pad(b1.reshape(1, -1).astype(jnp.bfloat16), ((0, 0), (0, hid_p - hid)))
    w2p = jnp.pad(w2.astype(jnp.bfloat16), ((0, hid_p - hid), (0, out_p - out_f)))
    b2p = jnp.pad(b2.reshape(1, -1).astype(jnp.bfloat16), ((0, 0), (0, out_p - out_f)))

    # k-1 intermediate hops (bf16 outputs, next hop's src norm folded in),
    # then the last hop fused with the MLP epilogue.
    for _ in range(k - 1):
        x = _propagate(adj_b, x, norm2_p, tile_m, tile_k)
    out = _propagate_mlp(adj_b, x, norm_p, w1p, b1p, w2p, b2p, tile_m, tile_k)

    return out[:n, :out_f]


def xavier_uniform_t(key, fan_in, fan_out):
    """nn.init.xavier_uniform_ on a [fan_out, fan_in] weight, returned transposed."""
    bound = (6.0 / (fan_in + fan_out)) ** 0.5
    w = jax.random.uniform(key, (fan_out, fan_in), minval=-bound, maxval=bound,
                           dtype=jnp.float32)
    return w.T                                              # [fan_in, fan_out]


if __name__ == "__main__":
    key = jax.random.PRNGKey(0)
    k_feat, k_w1, k_w2 = jax.random.split(key, 3)

    # Small shapes; N=256 with 128-tiles exercises a real 2x2 (dst, src) grid
    # and k=2 exercises both the intermediate-hop and fused-MLP kernels.
    N, in_feats, hid_feats, out_feats, k_hops = 256, 16, 32, 8, 2

    feat = jax.random.normal(k_feat, (N, in_feats), dtype=jnp.float32)

    # deterministic synthetic graph: ring + self loops (no 0-in-degree nodes)
    adj = jnp.eye(N, dtype=jnp.float32)
    adj = adj + jnp.roll(jnp.eye(N, dtype=jnp.float32), 1, axis=1)
    adj = adj + jnp.roll(jnp.eye(N, dtype=jnp.float32), -1, axis=1)
    adj = jnp.minimum(adj, 1.0)

    # parameters (Xavier-uniform weights, zero biases), deterministic
    w1 = xavier_uniform_t(k_w1, in_feats, hid_feats)        # [in, hid]
    b1 = jnp.zeros((hid_feats,), jnp.float32)
    w2 = xavier_uniform_t(k_w2, hid_feats, out_feats)       # [hid, out]
    b2 = jnp.zeros((out_feats,), jnp.float32)

    out = sgc2onv_pny_forward(adj, feat, w1, b1, w2, b2, k=k_hops,
                              max_tile_m=128, max_tile_k=128)
    out = jax.block_until_ready(out)

    # pure-JAX f32 reference for correctness
    degs = jnp.maximum(jnp.sum(adj, axis=1), 1.0)
    norm = jnp.power(degs, -0.5)[:, None]
    x = feat
    for _ in range(k_hops):
        x = (adj @ (x * norm)) * norm
    ref = jax.nn.sigmoid(
        jnp.maximum(x @ w1 + b1[None, :], 0.0) @ w2 + b2[None, :])

    assert out.shape == (N, out_feats)
    assert jnp.allclose(out, ref, atol=2e-2), "mismatch vs reference"

    print("KERNEL_OK")
</pallas_src>

<mosaic_0001>
module attributes {stable_mosaic.version = 11 : i64} {
  func.func @_propagate_kernel(%arg0: i32, %arg1: i32, %arg2: memref<128x128xbf16, #tpu.memory_space<vmem>>, %arg3: memref<128x128xbf16, #tpu.memory_space<vmem>>, %arg4: memref<128x1xf32, #tpu.memory_space<vmem>>, %arg5: memref<128x128xbf16, #tpu.memory_space<vmem>>, %arg6: memref<128x128xf32, #tpu.memory_space<vmem>>) attributes {dimension_semantics = [#tpu.dimension_semantics<parallel>, #tpu.dimension_semantics<arbitrary>], iteration_bounds = array<i64: 2, 2>, scalar_prefetch = 0 : i64, scratch_operands = 1 : i64, tpu.core_type = #tpu.core_type<tc>, window_params = [{transform_indices = @transform_0, window_bounds = array<i64: 128, 128>}, {transform_indices = @transform_1, window_bounds = array<i64: 128, 128>}, {transform_indices = @transform_2, window_bounds = array<i64: 128, 1>}, {transform_indices = @transform_3, window_bounds = array<i64: 128, 128>}]} {
    %c0_i32 = arith.constant 0 : i32
    %0 = arith.cmpi eq, %arg1, %c0_i32 : i32
    %1 = arith.extui %0 : i1 to i32
    %c0_i32_0 = arith.constant 0 : i32
    %2 = arith.cmpi ne, %1, %c0_i32_0 : i32
    scf.if %2 {
      %cst_9 = arith.constant 0.000000e+00 : f32
      %12 = vector.broadcast %cst_9 : f32 to vector<128x128xf32>
      %c0_10 = arith.constant 0 : index
      %c0_11 = arith.constant 0 : index
      %13 = vector.load %arg6[%c0_10, %c0_11] : memref<128x128xf32, #tpu.memory_space<vmem>>, vector<128x128xf32>
      tpu.vector_store %arg6[%c0_10, %c0_11], %12 {strides = array<i32>} : memref<128x128xf32, #tpu.memory_space<vmem>>, vector<128x128xf32>,
    } else {
    }
    %c0 = arith.constant 0 : index
    %c0_1 = arith.constant 0 : index
    %3 = vector.load %arg6[%c0, %c0_1] : memref<128x128xf32, #tpu.memory_space<vmem>>, vector<128x128xf32>
    %c0_2 = arith.constant 0 : index
    %c0_3 = arith.constant 0 : index
    %4 = vector.load %arg2[%c0_2, %c0_3] : memref<128x128xbf16, #tpu.memory_space<vmem>>, vector<128x128xbf16>
    %c0_4 = arith.constant 0 : index
    %c0_5 = arith.constant 0 : index
    %5 = vector.load %arg3[%c0_4, %c0_5] : memref<128x128xbf16, #tpu.memory_space<vmem>>, vector<128x128xbf16>
    %cst = arith.constant dense<0.000000e+00> : vector<128x128xf32>
    %6 = tpu.matmul %4, %5, %cst {dimension_numbers = #tpu.dot_dimension_numbers<[1], [0], [0], [1], [0, 0, 1, 1], [], []>} : vector<128x128xbf16>, vector<128x128xbf16>, vector<128x128xf32> -> vector<128x128xf32>
    %7 = arith.addf %3, %6 : vector<128x128xf32>
    %c0_6 = arith.constant 0 : index
    %c0_7 = arith.constant 0 : index
    %8 = vector.load %arg6[%c0_6, %c0_7] : memref<128x128xf32, #tpu.memory_space<vmem>>, vector<128x128xf32>
    tpu.vector_store %arg6[%c0_6, %c0_7], %7 {strides = array<i32>} : memref<128x128xf32, #tpu.memory_space<vmem>>, vector<128x128xf32>,
    %c1_i32 = arith.constant 1 : i32
    %9 = arith.cmpi eq, %arg1, %c1_i32 : i32
    %10 = arith.extui %9 : i1 to i32
    %c0_i32_8 = arith.constant 0 : i32
    %11 = arith.cmpi ne, %10, %c0_i32_8 : i32
    scf.if %11 {
      %c0_9 = arith.constant 0 : index
      %c0_10 = arith.constant 0 : index
      %12 = vector.load %arg6[%c0_9, %c0_10] : memref<128x128xf32, #tpu.memory_space<vmem>>, vector<128x128xf32>
      %c0_11 = arith.constant 0 : index
      %c0_12 = arith.constant 0 : index
      %13 = vector.load %arg4[%c0_11, %c0_12] : memref<128x1xf32, #tpu.memory_space<vmem>>, vector<128x1xf32>
      %14 = vector.broadcast %13 : vector<128x1xf32> to vector<128x128xf32>
      %15 = arith.mulf %12, %14 : vector<128x128xf32>
      %16 = arith.truncf %15 : vector<128x128xf32> to vector<128x128xbf16>
      %c0_13 = arith.constant 0 : index
      %c0_14 = arith.constant 0 : index
      %17 = vector.load %arg5[%c0_13, %c0_14] : memref<128x128xbf16, #tpu.memory_space<vmem>>, vector<128x128xbf16>
      tpu.vector_store %arg5[%c0_13, %c0_14], %16 {strides = array<i32>} : memref<128x128xbf16, #tpu.memory_space<vmem>>, vector<128x128xbf16>,
    } else {
    }
    return
  }
  func.func @transform_0(%arg0: i32, %arg1: i32) -> (i32, i32) {
    %c0_i32 = arith.constant 0 : i32
    return %arg0, %arg1 : i32, i32
  }
  func.func @transform_1(%arg0: i32, %arg1: i32) -> (i32, i32) {
    %c0_i32 = arith.constant 0 : i32
    %c0_i32_0 = arith.constant 0 : i32
    return %arg1, %c0_i32 : i32, i32
  }
  func.func @transform_2(%arg0: i32, %arg1: i32) -> (i32, i32) {
    %c0_i32 = arith.constant 0 : i32
    %c0_i32_0 = arith.constant 0 : i32
    return %arg0, %c0_i32 : i32, i32
  }
  func.func @transform_3(%arg0: i32, %arg1: i32) -> (i32, i32) {
    %c0_i32 = arith.constant 0 : i32
    %c0_i32_0 = arith.constant 0 : i32
    return %arg0, %c0_i32 : i32, i32
  }
}

</mosaic_0001>

<bundles_post_ra>
// kernel: tpu_custom_call.1
= control target key start
LH: loop header
LB: loop body
LE: loop exit
PB: predicated region body
PF: predicated region fallthrough
CT: control target
= control target key end

     0   :  { %s1843_s0 = inlined_call_operand.vmem [shape: bf16[256,256], index: 0, kind: input, shape index: {}]   ;;  %s1844_s1 = inlined_call_operand.hbm [shape: bf16[256,128], index: 1, kind: input, shape index: {}]   ;;  %s1845_s2 = inlined_call_operand.vmem [shape: f32[256,1], index: 2, kind: input, shape index: {}]   ;;  %s1846_s3 = inlined_call_operand.hbm [shape: bf16[256,128], index: 3, kind: output, shape index: {}]  }
   0x1   :  { %1852 = sst [smem:[#allocation15_spill]] %s1843_s0 }
   0x2   :  { %8 = vsyncpa [#allocation5], 0 }
   0x3   :  { %10 = vsyncpa [#allocation5 + $0x1], 0 }
   0x4   :  { %11 = vsyncpa [#allocation6], 0 }
   0x5   :  { %13 = vsyncpa [#allocation6 + $0x1], 0  ;;  %s1507_s12 = smov 0   ;;  %s1509_s13 = smov 0  }
   0x6   :  { %s1511_s14 = smov 0   ;;  %s1513_s15 = smov 0  }
   0x7   :  { %s1515_s16 = smov 0   ;;  %s1517_s17 = smov 0  }
   0x8   :  { %s1519_s18 = smov 0   ;;  %s1521_s19 = smov 0  }
   0x9   :  { %s1523_s20 = smov 0   ;;  %s1525_s21 = smov 0  }
   0xa   :  { %s1527_s22 = smov 0   ;;  %s1529_s23 = smov 0  }
   0xb   :  { %s1531_s24 = smov 0  }
   0xc LB: > { %1853 = sst [smem:[#allocation10_spill]] %s1469_s22  ;;  %s988_s25 = sadd.s32 4294967295, %s1477_s24   ;;  %s1477_s24 = sphi %s1531_s24, %s19_s24   ;;  %s1473_s23 = sphi %s1529_s23, %s1882_s23   ;;  %s1469_s22 = sphi %s1527_s22, %s1871_s22   ;;  %s1465_s21 = sphi %s1525_s21, %s1870_s21   ;;  %s1461_s20 = sphi %s1523_s20, %s1869_s20   ;;  %s1457_s19 = sphi %s1521_s19, %s1881_s19   ;;  %s1453_s18 = sphi %s1519_s18, %s1880_s18   ;;  %s1449_s17 = sphi %s1517_s17, %s1879_s17   ;;  %s1445_s16 = sphi %s1515_s16, %s1878_s16   ;;  %s1441_s15 = sphi %s1513_s15, %s1877_s15   ;;  %s1437_s14 = sphi %s1511_s14, %s1876_s14   ;;  %s1433_s13 = sphi %s1509_s13, %s1875_s13   ;;  %s1429_s12 = sphi %s1507_s12, %s1874_s12  }
   0xd   : > { %1854 = sst [smem:[#allocation11_spill]] %s1473_s23  ;;  %s28_s27 = sadd.s32 1, %s1469_s22 }
   0xe   : > { %s31_s28 = sadd.s32 1, %s1473_s23  ;;  %p29_p0 = scmp.ge.s32.totalorder %s28_s27, 2 }
   0xf   : > { %s40_s29 = sadd.s32 1, %s1457_s19  ;;  %p47_p1 = scmp.ne.s32.totalorder %s1457_s19, %s1453_s18 }
  0x10   : > { %p48_p2 = scmp.eq.s32.totalorder %s1477_s24, 0  ;;  %s1884_s27 = smov (%p29_p0, %s28_s27), 0 }
  0x11   : > { %1855 = sst [smem:[#allocation12_spill]] %s1884_s27  ;;  %s1886_s28 = smov (!%p29_p0, %s31_s28), %s1473_s23 }
  0x12   : > { %s36_s30 = ssub.s32 %s1469_s22, %s1884_s27  ;;  %p1585_p3 = por %p48_p2, %p47_p1 }
  0x13   : > { %p33_p4 = scmp.ge.s32.totalorder %s1886_s28, 2  ;;  %p64_p5 = scmp.eq.s32.totalorder %s36_s30, 0 }
  0x14   : > { %s66_s5 = sadd.s32 1, %s1449_s17  ;;  %p73_p6 = scmp.ne.s32.totalorder %s1449_s17, %s1445_s16 }
  0x15   : > { %s1888_s28 = smov (%p33_p4, %s1886_s28), 0  ;;  %p79_p8 = scmp.ne.s32.totalorder %s1445_s16, %s1441_s15 }
  0x16   : > { %1857 = sst [smem:[#allocation13_spill]] %s1888_s28  ;;  %s35_s7 = ssub.s32 %s1473_s23, %s1888_s28 }
  0x17   : > { %s1595_s6 = scalar_select %p64_p5, %s1449_s17, %s66_s5  }
  0x18   : > { %p1599_p7 = por %p73_p6, %p48_p2  ;;  %s37_s9 = sor.u32 %s36_s30, %s35_s7 }
  0x19   : > { %p38_p9 = scmp.eq.s32.totalorder %s37_s9, 0  ;;  %p80_p10 = scmp.eq.s32.totalorder %s988_s25, 0 }
  0x1a   : > { %p116_p11 = scmp.eq.s32.totalorder %s35_s7, 0  ;;  %s118_s10 = sadd.s32 1, %s1437_s14 }
  0x1b   : > { %s1609_s11 = scalar_select %p38_p9, %s1457_s19, %s40_s29  }
  0x1c   : > { %p1611_p12 = por %p80_p10, %p79_p8  ;;  %p128_p13 = scmp.ne.s32.totalorder %s1437_s14, %s1433_s13 }
  0x1d   : > { %1859 = sst [smem:[#allocation14_spill]] %s1609_s11  ;;  %p129_p0 = scmp.eq.s32.totalorder %s988_s25, 3 }
  0x1e   : > { %s1618_s5 = scalar_select %p116_p11, %s1437_s14, %s118_s10  }
  0x1f   : > { %p134_p1 = scmp.ne.s32.totalorder %s1433_s13, %s1429_s12  ;;  %s1861_s28 = sadd.s32 4294967294, %s1477_s24  }
  0x20   : > { %p135_p2 = scmp.eq.s32.totalorder %s1861_s28, 3  ;;  %p1626_p4 = por %p129_p0, %p128_p13 }
  0x21   : > { %p991_p6 = scmp.ge.s32.totalorder %s1477_s24, 4 }
  0x22   : > { %s1862_s15 = scalar_select %p1626_p4, 1, 0 }
  0x23   : > { %p1630_p5 = por %p135_p2, %p134_p1  ;;  %151 = sbr.rel (%p991_p6) target bundleno = 88 (0x58), region = 16 }
  0x25   : > { %s1863_s30 = scalar_select %p1630_p5, 1, 0 }
  0x2a   : > { %154 = sbr.rel (!%p1585_p3) target bundleno = 62 (0x3e), region = 20  ;;  %s156_s25 = sand.u32 (%p1585_p3), 1, %s1457_s19  }
  0x2b   : > { %s1044_s29 = sshll.u32 (%p1585_p3), %s1473_s23, 5  ;;  %s992_s28 = sshll.u32 (%p1585_p3), %s156_s25, 6 }
  0x2c   : > { %s161_s7 = sadd.s32 (%p1585_p3), %s1469_s22, %s1044_s29  ;;  %s1864_s0 = sld [smem:[#allocation15_spill]] (%p1585_p3) }
  0x2d   : > { %s995_s9 = sshll.u32 (%p1585_p3), %s161_s7, 2  ;;  %s158_s4 = scalar_lea.vmem (%p1585_p3), [#allocation3], %s992_s28 }
  0x32   : > { %s1643_s11 = scalar_lea.vmem %s1864_s0, %s995_s9 }
  0x33   : > { %v179_v0 = vld [vmem:[%s1643_s11] sm:$0xf]  ;;  %v181_v1 = vld [vmem:[%s1643_s11 + $0x8] sm:$0xf]  ;;  %v183_v2 = vld [vmem:[%s1643_s11 + $0x10] sm:$0xf] }
  0x34   : > { %180 = vst [vmem:[%s158_s4] sm:$0xf] %v179_v0  ;;  %182 = vst [vmem:[%s158_s4 + $0x4] sm:$0xf] %v181_v1  ;;  %v185_v3 = vld [vmem:[%s1643_s11 + $0x18] sm:$0xf] }
  0x35   : > { %184 = vst [vmem:[%s158_s4 + $0x8] sm:$0xf] %v183_v2  ;;  %v187_v4 = vld [vmem:[%s1643_s11 + $0x20] sm:$0xf]  ;;  %v189_v5 = vld [vmem:[%s1643_s11 + $0x28] sm:$0xf] }
  0x36   : > { %186 = vst [vmem:[%s158_s4 + $0xc] sm:$0xf] %v185_v3  ;;  %188 = vst [vmem:[%s158_s4 + $0x10] sm:$0xf] %v187_v4  ;;  %v191_v6 = vld [vmem:[%s1643_s11 + $0x30] sm:$0xf] }
  0x37   : > { %190 = vst [vmem:[%s158_s4 + $0x14] sm:$0xf] %v189_v5  ;;  %v193_v7 = vld [vmem:[%s1643_s11 + $0x38] sm:$0xf]  ;;  %v195_v8 = vld [vmem:[%s1643_s11 + $0x40] sm:$0xf] }
  0x38   : > { %192 = vst [vmem:[%s158_s4 + $0x18] sm:$0xf] %v191_v6  ;;  %194 = vst [vmem:[%s158_s4 + $0x1c] sm:$0xf] %v193_v7  ;;  %v197_v9 = vld [vmem:[%s1643_s11 + $0x48] sm:$0xf] }
  0x39   : > { %196 = vst [vmem:[%s158_s4 + $0x20] sm:$0xf] %v195_v8  ;;  %v199_v10 = vld [vmem:[%s1643_s11 + $0x50] sm:$0xf]  ;;  %v201_v11 = vld [vmem:[%s1643_s11 + $0x58] sm:$0xf] }
  0x3a   : > { %198 = vst [vmem:[%s158_s4 + $0x24] sm:$0xf] %v197_v9  ;;  %200 = vst [vmem:[%s158_s4 + $0x28] sm:$0xf] %v199_v10  ;;  %v203_v12 = vld [vmem:[%s1643_s11 + $0x60] sm:$0xf] }
  0x3b   : > { %202 = vst [vmem:[%s158_s4 + $0x2c] sm:$0xf] %v201_v11  ;;  %v205_v13 = vld [vmem:[%s1643_s11 + $0x68] sm:$0xf]  ;;  %v207_v14 = vld [vmem:[%s1643_s11 + $0x70] sm:$0xf] }
  0x3c   : > { %204 = vst [vmem:[%s158_s4 + $0x30] sm:$0xf] %v203_v12  ;;  %206 = vst [vmem:[%s158_s4 + $0x34] sm:$0xf] %v205_v13  ;;  %v209_v15 = vld [vmem:[%s1643_s11 + $0x78] sm:$0xf] }
  0x3d   : > { %208 = vst [vmem:[%s158_s4 + $0x38] sm:$0xf] %v207_v14  ;;  %210 = vst [vmem:[%s158_s4 + $0x3c] sm:$0xf] %v209_v15 }
  0x3e PF: > { %s266_s27 = sand.u32 1, %s1449_s17   ;;  %s1045_s25 = sshll.u32 %s1469_s22, 10 }
  0x3f   : > { %s996_s29 = sshll.u32 %s266_s27, 6  ;;  %s1666_s9 = scalar_lea.hbm %s1844_s1, %s1045_s25 }
  0x40   : > { %s270_s10 = scalar_lea.vmem [#allocation4], %s996_s29  ;;  %s1670_s11 = scalar_lea.sflag [#allocation5], %s266_s27 }
  0x41   : > { %s277_s0 = sshll.u32 %s270_s10, 4  ;;  %s1311_s4 = scalar_lea.hbm %s1666_s9, 1024  ;;  %s1668_s0 = int_to_ptr.vmem [resolvable:$true] %s277_s0 }
  0x42   : > { %p1312_p3 = scmp.ne.s32.totalorder %s1666_s9, %s1311_s4  ;;  %s1315_s25 = scalar_lea.hbm %s1844_s1, 2048 }
  0x43   : > { %p1316_p10 = scmp.lt.u32.totalorder %s1666_s9, %s1844_s1  ;;  %p1317_p11 = scmp.lt.u32.totalorder %s1315_s25, %s1311_s4 }
  0x44   : > { %p1313_p8 = pnand %p1312_p3, %p1599_p7  ;;  %p1319_p0 = scmp.lt.u32.totalorder %s1311_s4, %s1666_s9 }
  0x45   : > { %p1318_p13 = por %p1317_p11, %p1316_p10 }
  0x46   : > { %p1314_p9 = pneg %p1313_p8 }
  0x47   : > { %p1320_p1 = por %p1319_p0, %p1318_p13 }
  0x49   : > { %p1321_p2 = pnand %p1320_p1, %p1314_p9 }
  0x4b   : > { %1324 = shalt.err (!%p1321_p2)
}
  0x4c   : > { %s1325_s27 = scalar_lea.vmem %s1668_s0, 1024  ;;  %s1479_s22 = smov [#allocation4]  }
  0x4d   : > { %p1326_p6 = scmp.ne.s32.totalorder %s1668_s0, %s1325_s27  ;;  %s1329_s23 = sshll.u32 %s1479_s22, 4  ;;  %s1330_s23 = int_to_ptr.vmem [resolvable:$false] %s1329_s23 }
  0x4e   : > { %s1331_s29 = scalar_lea.vmem %s1330_s23, 2048  ;;  %p1332_p5 = scmp.lt.s32.totalorder %s1668_s0, %s1330_s23 }
  0x4f   : > { %p1327_p3 = pnand %p1326_p6, %p1599_p7  ;;  %p1333_p4 = scmp.lt.s32.totalorder %s1331_s29, %s1325_s27 }
  0x51   : > { %p1328_p8 = pneg %p1327_p3  ;;  %p1334_p10 = por %p1333_p4, %p1332_p5 }
  0x53   : > { %p1335_p11 = pnand %p1334_p10, %p1328_p8 }
  0x55   : > { %1338 = shalt.err (!%p1335_p11)
}
  0x56   : > { %s1480_s10 = smov 64   ;;  %s1481_s4 = smov 4  }
  0x57   : > { %1174 = dma.hbm_to_vmem [thread:$0]  (%p1599_p7), %s1666_s9, 1024, %s1668_s0, %s1670_s11, %s1480_s10, %s1480_s10, %s1481_s4  }
  0x58 PF: > { %p999_p9 = scmp.ge.s32.totalorder %s1477_s24, 1  ;;  %p294_p13 = scmp.lt.s32.totalorder %s1477_s24, 5 }
  0x5a   : > { %p295_p0 = pnand %p999_p9, %p294_p13 }
  0x5b   : > { %s301_s25 = sand.u32 (!%p295_p0), 1, %s1453_s18   ;;  %s307_s28 = sand.u32 (!%p295_p0), 1, %s1445_s16  }
  0x5c   : > { %298 = sbr.rel (%p295_p0) target bundleno = 517 (0x205), region = 69  ;;  %s1000_s7 = sshll.u32 (!%p295_p0), %s301_s25, 6 }
  0x5d   : > { %s1001_s27 = sshll.u32 (!%p295_p0), %s307_s28, 6  ;;  %s1698_s22 = scalar_lea.vmem (!%p295_p0), [#allocation3], %s1000_s7 }
  0x5e   : > { %s308_s23 = scalar_lea.sflag (!%p295_p0), [#allocation5], %s307_s28  ;;  %s1700_s29 = scalar_lea.vmem (!%p295_p0), [#allocation4], %s1001_s27 }
  0x63   : > { %1420 = dma.done.wait (%p1611_p12), %s308_s23, 1024  }
  0x64   : > { %1422 = vsyncadd (%p1611_p12), %s308_s23, 4294966272  ;;  %s340_s0 = sand.u32 1, %s1433_s13   ;;  %s1003_s8 = sshll.u32 %s1465_s21, 4 }
  0x65   : > { %s1002_s18 = sshll.u32 %s340_s0, 6  ;;  %p346_p7 = scmp.lt.s32.totalorder %s1003_s8, 31 }
  0x66   : > { %s1715_s25 = scalar_lea.vmem [#allocation7], %s1002_s18  ;;  %p1005_p4 = scmp.ne.s32.totalorder %s1461_s20, 0 }
  0x67   : > { %s1890_s8 = smov (!%p346_p7, %s1003_s8), 31  ;;  %v1482_v16 = vmov (!%p1005_p4), 0.0  }
  0x68   : > { %s1004_s9 = sshll.u32 %s1890_s8, 3  ;;  %356 = sbr.rel (%p1005_p4) target bundleno = 112 (0x70), region = 81  ;;  %357 = vst [vmem:[#allocation2] sm:$0xff] (!%p1005_p4), %v1482_v16  ;;  %358 = vst [vmem:[#allocation2 + $0x8] sm:$0xff] (!%p1005_p4), %v1482_v16 }
  0x69   : > { %s1713_s4 = scalar_lea.vmem %s1845_s2, %s1004_s9  ;;  %359 = vst [vmem:[#allocation2 + $0x10] sm:$0xff] (!%p1005_p4), %v1482_v16  ;;  %360 = vst [vmem:[#allocation2 + $0x18] sm:$0xff] (!%p1005_p4), %v1482_v16 }
  0x6a   : > { %361 = vst [vmem:[#allocation2 + $0x20] sm:$0xff] (!%p1005_p4), %v1482_v16  ;;  %362 = vst [vmem:[#allocation2 + $0x28] sm:$0xff] (!%p1005_p4), %v1482_v16 }
  0x6b   : > { %363 = vst [vmem:[#allocation2 + $0x30] sm:$0xff] (!%p1005_p4), %v1482_v16  ;;  %364 = vst [vmem:[#allocation2 + $0x38] sm:$0xff] (!%p1005_p4), %v1482_v16 }
  0x6c   : > { %365 = vst [vmem:[#allocation2 + $0x40] sm:$0xff] (!%p1005_p4), %v1482_v16  ;;  %366 = vst [vmem:[#allocation2 + $0x48] sm:$0xff] (!%p1005_p4), %v1482_v16 }
  0x6d   : > { %367 = vst [vmem:[#allocation2 + $0x50] sm:$0xff] (!%p1005_p4), %v1482_v16  ;;  %368 = vst [vmem:[#allocation2 + $0x58] sm:$0xff] (!%p1005_p4), %v1482_v16 }
  0x6e   : > { %369 = vst [vmem:[#allocation2 + $0x60] sm:$0xff] (!%p1005_p4), %v1482_v16  ;;  %370 = vst [vmem:[#allocation2 + $0x68] sm:$0xff] (!%p1005_p4), %v1482_v16 }
  0x6f   : > { %371 = vst [vmem:[#allocation2 + $0x70] sm:$0xff] %v1482_v16  ;;  %372 = vst [vmem:[#allocation2 + $0x78] sm:$0xff] %v1482_v16 }
  0x70 PF: > { %v1293_v17 = vld [vmem:[%s1700_s29] sm:$0xff]   ;;  %v1294_v18 = vld [vmem:[%s1700_s29 + $0x8] sm:$0xff]   ;;  %v1295_v19 = vld [vmem:[%s1700_s29 + $0x10] sm:$0xff]   ;;  %p1022_p12 = scmp.ne.s32.totalorder %s1461_s20, 1 }
  0x71   : > { %1126 = vmatprep.subr.bf16.mxu0 %v1293_v17  ;;  %1158 = vmatprep.subr.bf16.mxu1 %v1293_v17  ;;  %v1296_v20 = vld [vmem:[%s1700_s29 + $0x18] sm:$0xff]   ;;  %v1301_v21 = vld [vmem:[%s1698_s22] sm:$0xff]   ;;  %v1298_v24 = vld [vmem:[%s1700_s29 + $0x28] sm:$0xff]  }
  0x72   : > { %1127 = vmatpush3.bf16.msra.mxu0 %v1293_v17  ;;  %1166 = vmatpush3.bf16.msra.mxu1 %v1293_v17  ;;  %v1302_v22 = vld [vmem:[%s1698_s22 + $0x20] sm:$0xff]   ;;  %v1299_v25 = vld [vmem:[%s1700_s29 + $0x30] sm:$0xff]   ;;  %v1300_v26 = vld [vmem:[%s1700_s29 + $0x38] sm:$0xff]  }
  0x73   : > { %1128 = vmatprep.subr.bf16.mxu0 %v1294_v18  ;;  %1159 = vmatprep.subr.bf16.mxu1 %v1294_v18  ;;  %v1297_v23 = vld [vmem:[%s1700_s29 + $0x20] sm:$0xff]   ;;  %v1303_v27 = vld [vmem:[%s1698_s22 + $0x8] sm:$0xff]   ;;  %v1305_v29 = vld [vmem:[%s1698_s22 + $0x10] sm:$0xff]  }
  0x74   : > { %1142 = vmatprep.mubr.bf16.mxu0 %v1301_v21  ;;  %1150 = vmatprep.mubr.bf16.mxu1 %v1302_v22  ;;  %v1304_v28 = vld [vmem:[%s1698_s22 + $0x28] sm:$0xff]   ;;  %v1306_v30 = vld [vmem:[%s1698_s22 + $0x30] sm:$0xff]   ;;  %v1307_v31 = vld [vmem:[%s1698_s22 + $0x18] sm:$0xff]  }
  0x75   : > { %v1308_v32 = vld [vmem:[%s1698_s22 + $0x38] sm:$0xff]   ;;  %v375_v33 = vld [vmem:[#allocation2 + $0x10] sm:$0xff]  ;;  %v373_v35 = vld [vmem:[#allocation2] sm:$0xff] }
  0x76   : > { %1129 = vmatpush3.bf16.msra.mxu0 %v1294_v18  ;;  %1167 = vmatpush3.bf16.msra.mxu1 %v1294_v18  ;;  %v383_v34 = vld [vmem:[#allocation2 + $0x50] sm:$0xff]  ;;  %v381_v36 = vld [vmem:[#allocation2 + $0x40] sm:$0xff]  ;;  %v376_v39 = vld [vmem:[#allocation2 + $0x18] sm:$0xff] }
  0x77   : > { %1130 = vmatprep.subr.bf16.mxu0 %v1295_v19  ;;  %1160 = vmatprep.subr.bf16.mxu1 %v1295_v19  ;;  %v384_v40 = vld [vmem:[#allocation2 + $0x58] sm:$0xff]  ;;  %v374_v45 = vld [vmem:[#allocation2 + $0x8] sm:$0xff]  ;;  %v379_v57 = vld [vmem:[#allocation2 + $0x30] sm:$0xff] }
  0x78   : > { %v382_v46 = vld [vmem:[#allocation2 + $0x48] sm:$0xff]  ;;  %v387_v58 = vld [vmem:[#allocation2 + $0x70] sm:$0xff]  ;;  %v377_v59 = vld [vmem:[#allocation2 + $0x20] sm:$0xff] }
  0x79   : > { %v385_v60 = vld [vmem:[#allocation2 + $0x60] sm:$0xff]  ;;  %v380_v63 = vld [vmem:[#allocation2 + $0x38] sm:$0xff]  ;;  %v378_v5 = vld [vmem:[#allocation2 + $0x28] sm:$0xff] }
  0x7a   : > { %1131 = vmatpush3.bf16.msra.mxu0 %v1295_v19  ;;  %1168 = vmatpush3.bf16.msra.mxu1 %v1295_v19  ;;  %v388_v0 = vld [vmem:[#allocation2 + $0x78] sm:$0xff]  ;;  %v386_v6 = vld [vmem:[#allocation2 + $0x68] sm:$0xff]  ;;  %v668_v17 = vld [vmem:[%s1713_s4 + $0x10] sm:$0xff] (!%p1022_p12)  ;;  %v1483_v19 = vmov (!%p1022_p12), 0  }
  0x7b   : > { %1132 = vmatprep.subr.bf16.mxu0 %v1296_v20  ;;  %1161 = vmatprep.subr.bf16.mxu1 %v1296_v20  ;;  %v666_v18 = vld [vmem:[%s1713_s4] sm:$0xff] (!%p1022_p12)  ;;  %v667_v21 = vld [vmem:[%s1713_s4 + $0x8] sm:$0xff] (!%p1022_p12) }
  0x7c   : > { %1310 = vset.pattern.permute.xlu1 (!%p1022_p12), %v1483_v19  ;;  %1309 = vset.pattern.permute.xlu0 (!%p1022_p12), %v1483_v19  ;;  %v671_v22 = vld [vmem:[%s1713_s4 + $0x28] sm:$0xff] (!%p1022_p12) }
  0x7d   : > { %694 = vperm.xlu1 (!%p1022_p12), %1310, %v668_v17   ;;  %684 = vperm.xlu0 (!%p1022_p12), %1309, %v666_v18  }
  0x7e   : > { %1133 = vmatpush3.bf16.msra.mxu0 %v1296_v20  ;;  %1169 = vmatpush3.bf16.msra.mxu1 %v1296_v20  ;;  %v669_v20 = vld [vmem:[%s1713_s4 + $0x18] sm:$0xff] (!%p1022_p12) }
  0x7f   : > { %1134 = vmatprep.subr.bf16.mxu0 %v1297_v23  ;;  %1162 = vmatprep.subr.bf16.mxu1 %v1297_v23 }
  0x81   : > { %699 = vperm.xlu1 (!%p1022_p12), %1310, %v669_v20   ;;  %689 = vperm.xlu0 (!%p1022_p12), %1309, %v667_v21  }
  0x82   : > { %1135 = vmatpush3.bf16.msra.mxu0 %v1297_v23  ;;  %1170 = vmatpush3.bf16.msra.mxu1 %v1297_v23  ;;  %v670_v23 = vld [vmem:[%s1713_s4 + $0x20] sm:$0xff] (!%p1022_p12) }
  0x83   : > { %1136 = vmatprep.subr.bf16.mxu0 %v1298_v24  ;;  %1163 = vmatprep.subr.bf16.mxu1 %v1298_v24 }
  0x85   : > { %709 = vperm.xlu1 (!%p1022_p12), %1310, %v671_v22   ;;  %704 = vperm.xlu0 (!%p1022_p12), %1309, %v670_v23  }
  0x86   : > { %1137 = vmatpush3.bf16.msra.mxu0 %v1298_v24  ;;  %1171 = vmatpush3.bf16.msra.mxu1 %v1298_v24  ;;  %v673_v24 = vld [vmem:[%s1713_s4 + $0x38] sm:$0xff] (!%p1022_p12) }
  0x87   : > { %1138 = vmatprep.subr.bf16.mxu0 %v1299_v25  ;;  %1164 = vmatprep.subr.bf16.mxu1 %v1299_v25 }
  0x89   : > { %719 = vperm.xlu1 (!%p1022_p12), %1310, %v673_v24  }
  0x8a   : > { %1139 = vmatpush3.bf16.msra.mxu0 %v1299_v25  ;;  %1172 = vmatpush3.bf16.msra.mxu1 %v1299_v25  ;;  %v672_v25 = vld [vmem:[%s1713_s4 + $0x30] sm:$0xff] (!%p1022_p12) }
  0x8b   : > { %1140 = vmatprep.subr.bf16.mxu0 %v1300_v26  ;;  %1165 = vmatprep.subr.bf16.mxu1 %v1300_v26 }
  0x8c   : > { %714 = vperm.xlu0 (!%p1022_p12), %1309, %v672_v25  }
  0x8e   : > { %1141 = vmatpush3.bf16.msra.mxu0 %v1300_v26  ;;  %1173 = vmatpush3.bf16.msra.mxu1 %v1300_v26  ;;  %v675_v26 = vld [vmem:[%s1713_s4 + $0x48] sm:$0xff] (!%p1022_p12) }
  0x8f   : > { %729 = vperm.xlu1 (!%p1022_p12), %1310, %v675_v26  }
  0x91   : > { %1143 = vmatmul.mubr.bf16.vlgmr.msra.gmra.mrb[0].mxu0 %v1303_v27  ;;  %1151 = vmatmul.mubr.bf16.vlgmr.msra.gmra.mrb[0].mxu1 %v1304_v28  ;;  %v674_v27 = vld [vmem:[%s1713_s4 + $0x40] sm:$0xff] (!%p1022_p12)  ;;  %v677_v28 = vld [vmem:[%s1713_s4 + $0x58] sm:$0xff] (!%p1022_p12) }
  0x92   : > { %1146 = vmatprep.mubr.bf16.mxu0 %v1305_v29  ;;  %1154 = vmatprep.mubr.bf16.mxu1 %v1306_v30  ;;  %v676_v29 = vld [vmem:[%s1713_s4 + $0x50] sm:$0xff] (!%p1022_p12)  ;;  %v679_v30 = vld [vmem:[%s1713_s4 + $0x68] sm:$0xff] (!%p1022_p12) }
  0x93   : > { %724 = vperm.xlu0 (!%p1022_p12), %1309, %v674_v27   ;;  %739 = vperm.xlu1 (!%p1022_p12), %1310, %v677_v28  }
  0x97   : > { %734 = vperm.xlu0 (!%p1022_p12), %1309, %v676_v29   ;;  %749 = vperm.xlu1 (!%p1022_p12), %1310, %v679_v30  }
  0x99   : > { %1147 = vmatmul.mubr.bf16.gmra.mrb[4].mxu0 %v1307_v31  ;;  %1155 = vmatmul.mubr.bf16.gmra.mrb[4].mxu1 %v1308_v32  ;;  %v678_v31 = vld [vmem:[%s1713_s4 + $0x60] sm:$0xff] (!%p1022_p12)  ;;  %v681_v32 = vld [vmem:[%s1713_s4 + $0x78] sm:$0xff] (!%p1022_p12) }
  0x9b   : > { %744 = vperm.xlu0 (!%p1022_p12), %1309, %v678_v31   ;;  %759 = vperm.xlu1 (!%p1022_p12), %1310, %v681_v32  }
 0x164   : > { %v1144_v37 = vpop.f32.mrb[0].mxu0  ;;  %v1152_v38 = vpop.f32.mrb[0].mxu1 }
 0x165   : > { %v616_v41 = vadd.f32 %v1144_v37, %v375_v33  ;;  %v624_v42 = vadd.f32 %v1152_v38, %v383_v34  ;;  %v551_v43 = vpop.f32.mrb[1].mxu0  ;;  %v583_v44 = vpop.f32.mrb[1].mxu1  ;;  %v680_v33 = vld [vmem:[%s1713_s4 + $0x70] sm:$0xff] (!%p1022_p12) }
 0x166   : > { %v614_v47 = vadd.f32 %v551_v43, %v373_v35  ;;  %v622_v48 = vadd.f32 %v583_v44, %v381_v36  ;;  %v1145_v49 = vpop.f32.mrb[2].mxu0  ;;  %v1153_v50 = vpop.f32.mrb[2].mxu1  ;;  %754 = vperm.xlu0 (!%p1022_p12), %1309, %v680_v33  }
 0x167   : > { %632 = vst [vmem:[#allocation2 + $0x10] sm:$0xff] %v616_v41  ;;  %640 = vst [vmem:[#allocation2 + $0x50] sm:$0xff] %v624_v42  ;;  %v617_v51 = vadd.f32 %v1145_v49, %v376_v39  ;;  %v625_v52 = vadd.f32 %v1153_v50, %v384_v40  ;;  %v554_v53 = vpop.f32.mrb[3].mxu0  ;;  %v586_v54 = vpop.f32.mrb[3].mxu1 }
 0x168   : > { %630 = vst [vmem:[#allocation2] sm:$0xff] %v614_v47  ;;  %638 = vst [vmem:[#allocation2 + $0x40] sm:$0xff] %v622_v48  ;;  %v615_v55 = vadd.f32 %v554_v53, %v374_v45  ;;  %v623_v56 = vadd.f32 %v586_v54, %v382_v46  ;;  %v695_v34 = vpop.permute.xlu1 (!%p1022_p12), %694  ;;  %v685_v35 = vpop.permute.xlu0 (!%p1022_p12), %684 }
 0x169   : > { %633 = vst [vmem:[#allocation2 + $0x18] sm:$0xff] %v617_v51  ;;  %641 = vst [vmem:[#allocation2 + $0x58] sm:$0xff] %v625_v52 }
 0x16a   : > { %631 = vst [vmem:[#allocation2 + $0x8] sm:$0xff] %v615_v55  ;;  %639 = vst [vmem:[#allocation2 + $0x48] sm:$0xff] %v623_v56 }
 0x16c   : > { %v1148_v61 = vpop.f32.mrb[4].mxu0  ;;  %v1156_v62 = vpop.f32.mrb[4].mxu1  ;;  %649 = sbr.rel (%p1022_p12) target bundleno = 491 (0x1eb), region = 85 }
 0x16d   : > { %v620_v1 = vadd.f32 %v1148_v61, %v379_v57  ;;  %v628_v2 = vadd.f32 %v1156_v62, %v387_v58  ;;  %v567_v3 = vpop.f32.mrb[5].mxu0  ;;  %v599_v4 = vpop.f32.mrb[5].mxu1 }
 0x16e   : > { %v618_v7 = vadd.f32 %v567_v3, %v377_v59  ;;  %v626_v8 = vadd.f32 %v599_v4, %v385_v60  ;;  %v1149_v9 = vpop.f32.mrb[6].mxu0  ;;  %v1157_v10 = vpop.f32.mrb[6].mxu1  ;;  %v652_v36 = vld [vmem:[#allocation2 + $0x10] sm:$0xff] (!%p1022_p12) }
 0x16f   : > { %636 = vst [vmem:[#allocation2 + $0x30] sm:$0xff] %v620_v1  ;;  %644 = vst [vmem:[#allocation2 + $0x70] sm:$0xff] %v628_v2  ;;  %v621_v11 = vadd.f32 %v1149_v9, %v380_v63  ;;  %v629_v12 = vadd.f32 %v1157_v10, %v388_v0  ;;  %v570_v13 = vpop.f32.mrb[7].mxu0  ;;  %v602_v14 = vpop.f32.mrb[7].mxu1  ;;  %v650_v37 = vld [vmem:[#allocation2] sm:$0xff] (!%p1022_p12)  ;;  %v764_v42 = vmul.f32 (!%p1022_p12), %v695_v34, %v652_v36 }
 0x170   : > { %634 = vst [vmem:[#allocation2 + $0x20] sm:$0xff] %v618_v7  ;;  %642 = vst [vmem:[#allocation2 + $0x60] sm:$0xff] %v626_v8  ;;  %v619_v15 = vadd.f32 %v570_v13, %v378_v5  ;;  %v627_v16 = vadd.f32 %v602_v14, %v386_v6  ;;  %v653_v38 = vld [vmem:[#allocation2 + $0x18] sm:$0xff] (!%p1022_p12)  ;;  %v700_v40 = vpop.permute.xlu1 (!%p1022_p12), %699  ;;  %v690_v41 = vpop.permute.xlu0 (!%p1022_p12), %689  ;;  %v762_v43 = vmul.f32 (!%p1022_p12), %v685_v35, %v650_v37  ;;  %v658_v62 = vld [vmem:[#allocation2 + $0x40] sm:$0xff] (!%p1022_p12) }
 0x171   : > { %637 = vst [vmem:[#allocation2 + $0x38] sm:$0xff] %v621_v11  ;;  %645 = vst [vmem:[#allocation2 + $0x78] sm:$0xff] %v629_v12  ;;  %v651_v39 = vld [vmem:[#allocation2 + $0x8] sm:$0xff] (!%p1022_p12)  ;;  %v765_v44 = vmul.f32 (!%p1022_p12), %v700_v40, %v653_v38  ;;  %v661_v4 = vld [vmem:[#allocation2 + $0x58] sm:$0xff] (!%p1022_p12) }
 0x172   : > { %635 = vst [vmem:[#allocation2 + $0x28] sm:$0xff] %v619_v15  ;;  %643 = vst [vmem:[#allocation2 + $0x68] sm:$0xff] %v627_v16  ;;  %v763_v45 = vmul.f32 (!%p1022_p12), %v690_v41, %v651_v39  ;;  %v659_v61 = vld [vmem:[#allocation2 + $0x48] sm:$0xff] (!%p1022_p12)  ;;  %v660_v5 = vld [vmem:[#allocation2 + $0x50] sm:$0xff] (!%p1022_p12) }
 0x173   : > { %v1071_v48 = vpack.c.bf16 %v765_v44, %v764_v42 }
 0x174   : > { %v1066_v49 = vpack.c.bf16 %v763_v45, %v762_v43  ;;  %v710_v50 = vpop.permute.xlu1 %709  ;;  %v705_v51 = vpop.permute.xlu0 %704 }
 0x175   : > { %1103 = vst [vmem:[%s1715_s25 + $0x8] sm:$0xff] %v1071_v48  }
 0x176   : > { %1067 = vst [vmem:[%s1715_s25] sm:$0xff] %v1066_v49   ;;  %v656_v55 = vld [vmem:[#allocation2 + $0x30] sm:$0xff] }
 0x177   : > { %v654_v47 = vld [vmem:[#allocation2 + $0x20] sm:$0xff]  ;;  %v664_v19 = vld [vmem:[#allocation2 + $0x70] sm:$0xff] }
 0x178   : > { %v766_v53 = vmul.f32 %v705_v51, %v654_v47  ;;  %v657_v54 = vld [vmem:[#allocation2 + $0x38] sm:$0xff]  ;;  %v720_v57 = vpop.permute.xlu1 %719  ;;  %v715_v58 = vpop.permute.xlu0 %714  ;;  %v662_v12 = vld [vmem:[#allocation2 + $0x60] sm:$0xff] }
 0x179   : > { %v655_v46 = vld [vmem:[#allocation2 + $0x28] sm:$0xff]  ;;  %v769_v59 = vmul.f32 %v720_v57, %v657_v54  ;;  %v768_v60 = vmul.f32 %v715_v58, %v656_v55  ;;  %v665_v18 = vld [vmem:[#allocation2 + $0x78] sm:$0xff] }
 0x17a   : > { %v767_v52 = vmul.f32 %v710_v50, %v655_v46  ;;  %v663_v11 = vld [vmem:[#allocation2 + $0x68] sm:$0xff] }
 0x17b   : > { %v1081_v63 = vpack.c.bf16 %v769_v59, %v768_v60 }
 0x17c   : > { %v1076_v56 = vpack.c.bf16 %v767_v52, %v766_v53  ;;  %v730_v0 = vpop.permute.xlu1 %729  ;;  %v725_v1 = vpop.permute.xlu0 %724 }
 0x17d   : > { %1105 = vst [vmem:[%s1715_s25 + $0x18] sm:$0xff] %v1081_v63   ;;  %v771_v2 = vmul.f32 %v730_v0, %v659_v61  ;;  %v770_v3 = vmul.f32 %v725_v1, %v658_v62 }
 0x17e   : > { %1104 = vst [vmem:[%s1715_s25 + $0x10] sm:$0xff] %v1076_v56  }
 0x17f   : > { %v1086_v6 = vpack.c.bf16 %v771_v2, %v770_v3 }
 0x180   : > { %v740_v7 = vpop.permute.xlu1 %739  ;;  %v735_v8 = vpop.permute.xlu0 %734 }
 0x181   : > { %1106 = vst [vmem:[%s1715_s25 + $0x20] sm:$0xff] %v1086_v6   ;;  %v773_v9 = vmul.f32 %v740_v7, %v661_v4  ;;  %v772_v10 = vmul.f32 %v735_v8, %v660_v5 }
 0x183   : > { %v1091_v13 = vpack.c.bf16 %v773_v9, %v772_v10 }
 0x184   : > { %v750_v14 = vpop.permute.xlu1 %749  ;;  %v745_v15 = vpop.permute.xlu0 %744 }
 0x185   : > { %1107 = vst [vmem:[%s1715_s25 + $0x28] sm:$0xff] %v1091_v13   ;;  %v775_v16 = vmul.f32 %v750_v14, %v663_v11  ;;  %v774_v17 = vmul.f32 %v745_v15, %v662_v12 }
 0x187   : > { %v1096_v20 = vpack.c.bf16 %v775_v16, %v774_v17 }
 0x188   : > { %v760_v21 = vpop.permute.xlu1 %759 }
 0x189   : > { %1108 = vst [vmem:[%s1715_s25 + $0x30] sm:$0xff] %v1096_v20   ;;  %v777_v23 = vmul.f32 %v760_v21, %v665_v18 }
 0x1e5   : > { %v755_v22 = vpop.permute.xlu0 %754 }
 0x1e6   : > { %v776_v24 = vmul.f32 %v755_v22, %v664_v19 }
 0x1e8   : > { %v1101_v25 = vpack.c.bf16 %v777_v23, %v776_v24 }
 0x1ea   : > { %1109 = vst [vmem:[%s1715_s25 + $0x38] sm:$0xff] %v1101_v25  }
 0x1eb PF: > { %s1062_s20 = sshll.u32 %s1465_s21, 10  ;;  %s872_s27 = sshll.u32 %s1715_s25, 4  ;;  %s1766_s27 = int_to_ptr.vmem [resolvable:$true] %s872_s27 }
 0x1ec   : > { %s1763_s7 = scalar_lea.hbm %s1846_s3, %s1062_s20  ;;  %s1770_s22 = scalar_lea.sflag [#allocation6], %s340_s0 }
 0x1ed   : > { %s1339_s23 = scalar_lea.vmem %s1766_s27, 1024  ;;  %p1865_p1 = scmp.ne.s32.totalorder %s1862_s15, 0 }
 0x1ee   : > { %p1340_p5 = scmp.ne.s32.totalorder %s1766_s27, %s1339_s23  ;;  %s1484_s21 = smov [#allocation7]  }
 0x1ef   : > { %s1343_s29 = sshll.u32 %s1484_s21, 4  ;;  %s1344_s29 = int_to_ptr.vmem [resolvable:$false] %s1343_s29 }
 0x1f0   : > { %p1341_p2 = pnand %p1340_p5, %p1865_p1  ;;  %s1345_s8 = scalar_lea.vmem %s1344_s29, 2048 }
 0x1f1   : > { %p1346_p3 = scmp.lt.s32.totalorder %s1766_s27, %s1344_s29  ;;  %p1347_p8 = scmp.lt.s32.totalorder %s1345_s8, %s1339_s23 }
 0x1f2   : > { %p1342_p6 = pneg %p1341_p2 }
 0x1f3   : > { %p1348_p10 = por %p1347_p8, %p1346_p3 }
 0x1f5   : > { %p1349_p11 = pnand %p1348_p10, %p1342_p6 }
 0x1f7   : > { %1352 = shalt.err (!%p1349_p11)
}
 0x1f8   : > { %s1353_s0 = scalar_lea.hbm %s1763_s7, 1024  ;;  %s1357_s11 = scalar_lea.hbm %s1846_s3, 2048 }
 0x1f9   : > { %p1354_p9 = scmp.ne.s32.totalorder %s1763_s7, %s1353_s0  ;;  %p1358_p7 = scmp.lt.u32.totalorder %s1763_s7, %s1846_s3 }
 0x1fa   : > { %p1359_p4 = scmp.lt.u32.totalorder %s1357_s11, %s1353_s0  ;;  %p1361_p5 = scmp.lt.u32.totalorder %s1353_s0, %s1763_s7 }
 0x1fb   : > { %p1355_p13 = pnand %p1354_p9, %p1865_p1 }
 0x1fc   : > { %p1360_p12 = por %p1359_p4, %p1358_p7 }
 0x1fd   : > { %p1356_p0 = pneg %p1355_p13 }
 0x1fe   : > { %p1362_p2 = por %p1361_p5, %p1360_p12 }
 0x200   : > { %p1363_p6 = pnand %p1362_p2, %p1356_p0 }
 0x202   : > { %1366 = shalt.err (!%p1363_p6)
}
 0x203   : > { %s1485_s25 = smov 64   ;;  %s1486_s20 = smov 4  }
 0x204   : > { %1176 = dma.vmem_to_hbm [thread:$0]  (%p1865_p1), %s1766_s27, 1024, %s1763_s7, %s1770_s22, %s1485_s25, %s1485_s25, %s1486_s20  }
 0x205 PF: > { %p1182_p3 = scmp.ge.s32.totalorder %s1477_s24, 2  ;;  %s887_s26 = sand.u32 1, %s1429_s12  }
 0x206   : > { %p1866_p8 = scmp.ne.s32.totalorder %s1863_s30, 0  ;;  %s888_s28 = scalar_lea.sflag [#allocation6], %s887_s26 }
 0x208   : > { %p1179_p10 = pnand %p1182_p3, %p1866_p8 }
 0x20a   : > { %1424 = dma.done.wait (!%p1179_p10), %s888_s28, 1024  }
 0x20b   : > { %1426 = vsyncadd (!%p1179_p10), %s888_s28, 4294966272  ;;  %s19_s24 = sadd.s32 1, %s1477_s24   ;;  %s1868_s7 = sld [smem:[#allocation14_spill]] }
 0x20c   : > { %p1799_p11 = scmp.ge.s32.totalorder %s19_s24, 6   ;;  %s1869_s20 = sld [smem:[#allocation10_spill]] }
 0x20d   : > { %s1870_s21 = sld [smem:[#allocation11_spill]]  ;;  %s1871_s22 = sld [smem:[#allocation12_spill]] }
 0x20e   : > { %s1872_s30 = sld [smem:[#allocation13_spill]]  ;;  %s1874_s12 = smov %s1433_s13 }
 0x20f   : > { %s1875_s13 = smov %s1437_s14  ;;  %s1876_s14 = smov %s1618_s5 }
 0x210   : > { %s1877_s15 = smov %s1445_s16  ;;  %s1878_s16 = smov %s1449_s17 }
 0x211   : > { %s1879_s17 = smov %s1595_s6  ;;  %s1880_s18 = smov %s1457_s19 }
 0x212   : > { %s1881_s19 = smov %s1868_s7  ;;  %18 = sbr.rel (!%p1799_p11) target bundleno = 12 (0xc), region = 137 }
 0x214   : > { %s1882_s23 = smov %s1872_s30 }
 0x219   :  { %893 = vsyncpa [#allocation5], 1 }
 0x21a   :  { %895 = vsyncpa [#allocation5 + $0x1], 1 }
 0x21b   :  { %896 = vsyncpa [#allocation6], 1 }
 0x21c   :  { %898 = vsyncpa [#allocation6 + $0x1], 1 }

</bundles_post_ra>
